<compile_context>
chip_gen: v7x
topology: tpu7x:2x2x1
jax: 0.10.0
libtpu: 0.0.40
codegen_flags: <defaults>
</compile_context>

<pallas_src>
import functools

import jax
import jax.numpy as jnp
from jax.experimental import pallas as pl
from jax.experimental.pallas import tpu as pltpu


def _distill_kl_kernel(ys_ref, yt_ref, out_ref, *, inv_t: float, n_total: int,
                       approx_recip: bool):
    """One (TN, C) row-tile of both logit arrays -> one scalar partial sum."""
    i = pl.program_id(0)
    tn = ys_ref.shape[0]

    # Stream logits through VMEM; compute in f32 (inputs may be bf16 to halve
    # HBM traffic).  Multiply by 1/T instead of dividing.
    ys = ys_ref[...].astype(jnp.float32) * inv_t
    yt = yt_ref[...].astype(jnp.float32) * inv_t

    # Row-wise max for numerical stability (class axis C maps to lanes).
    ys_shift = ys - jnp.max(ys, axis=1, keepdims=True)
    yt_shift = yt - jnp.max(yt, axis=1, keepdims=True)

    sum_s = jnp.sum(jnp.exp(ys_shift), axis=1, keepdims=True)   # (TN, 1)
    exp_t = jnp.exp(yt_shift)                                    # (TN, C)
    sum_t = jnp.sum(exp_t, axis=1, keepdims=True)                # (TN, 1)

    # Fused KL (perf review): with p_t = exp_t / sum_t,
    #   log_p_t - log_p_s = (yt_shift - ys_shift) - (log(sum_t) - log(sum_s))
    #   per_row = (1/sum_t) * sum_c exp_t * ((yt_shift - ys_shift) - row_const)
    row_const = jnp.log(sum_t) - jnp.log(sum_s)                  # (TN, 1)
    weighted = jnp.sum(exp_t * ((yt_shift - ys_shift) - row_const),
                       axis=1, keepdims=True)                    # (TN, 1)
    per_row = weighted * pl.reciprocal(sum_t, approx=approx_recip)

    # Mask padded rows of the last (partial) tile BEFORE the cross-row sum so
    # any NaN/Inf from uninitialized block padding is discarded by the select.
    row_ids = i * tn + jax.lax.broadcasted_iota(jnp.int32, (tn, 1), 0)
    per_row = jnp.where(row_ids < n_total, per_row, 0.0)
    partial = jnp.sum(per_row)

    # Lane-dense (8, 128) partial block (unmasked vst); wrapper reduces/scales.
    out_ref[...] = jnp.zeros((8, 128), jnp.float32) + partial


def _choose_tile_n(N: int, C: int, itemsize: int) -> int:
    """Row-tile size: ~2 MiB per input block, multiple of 16 rows, cap 8192.

    Tries to keep the number of tiles even (>= 2) so the 'parallel' grid axis
    splits evenly across v7x's two TensorCores (a no-op on v5e/v6e).
    """
    budget_bytes = 2 * 1024 * 1024
    tn = (budget_bytes // max(C * itemsize, 1)) // 16 * 16
    tn = max(16, min(8192, tn))

    if N <= tn:
        if N >= 64:
            # Split into two tiles so both v7x TensorCores get work.
            return ((N + 1) // 2 + 15) // 16 * 16
        return N  # single block equal to the full dim is always legal

    num_tiles = -(-N // tn)
    if num_tiles > 1 and num_tiles % 2 == 1:
        tn_alt = ((-(-N // (num_tiles + 1)) + 15) // 16) * 16
        if tn_alt >= 16 and (-(-N // tn_alt)) % 2 == 0:
            tn = tn_alt
    return tn


def distill_kl(y_s: jax.Array, y_t: jax.Array, T: float,
               tile_n: int | None = None,
               approx_recip: bool = False) -> jax.Array:
    """KL distillation loss; y_s, y_t: [N, C] logits (f32 or bf16). Scalar out.

    bf16 logits are streamed as-is (do NOT upcast at the call site): the kernel
    is HBM-bandwidth-bound and bf16 inputs halve DMA bytes; math stays in f32.
    `approx_recip=True` routes the per-row softmax denominator through the EUP
    approx reciprocal (v7x knob; ~1e-4 relative effect on the loss).
    """
    assert y_s.shape == y_t.shape and y_s.ndim == 2
    N, C = y_s.shape
    itemsize = max(jnp.dtype(y_s.dtype).itemsize, jnp.dtype(y_t.dtype).itemsize)
    tn = int(tile_n) if tile_n is not None else _choose_tile_n(N, C, itemsize)
    num_tiles = pl.cdiv(N, tn)

    # NOTE: n_total / inv_t are baked into the kernel, so each distinct (N, T)
    # triggers a recompile -- fine for fixed-shape training loops.
    # TODO(synk): for vocab-scale C (>=32k classes) also tile C and use an
    # online / two-pass logsumexp so the working set stays within scoped VMEM.
    kernel = functools.partial(
        _distill_kl_kernel,
        inv_t=1.0 / float(T),
        n_total=N,
        approx_recip=bool(approx_recip),
    )

    partials = pl.pallas_call(
        kernel,
        out_shape=jax.ShapeDtypeStruct((8, num_tiles * 128), jnp.float32),
        grid_spec=pltpu.PrefetchScalarGridSpec(
            num_scalar_prefetch=0,
            grid=(num_tiles,),
            in_specs=[
                pl.BlockSpec((tn, C), lambda i: (i, 0)),
                pl.BlockSpec((tn, C), lambda i: (i, 0)),
            ],
            out_specs=pl.BlockSpec((8, 128), lambda i: (0, i)),
        ),
        compiler_params=pltpu.CompilerParams(
            # Independent tiles -> v7x's two TensorCores can split the grid.
            dimension_semantics=("parallel",),
            # Preserve full-size double-buffered tiles on every generation;
            # sized against v7x's 64 MiB physical VMEM (v5e/v6e have 128 MiB).
            vmem_limit_bytes=48 * 1024 * 1024,
        ),
    )(y_s, y_t)

    # Every lane of each (8,128) block holds the same per-tile partial, so one
    # fused reduce + rescale replaces the old strided-gather epilogue.
    return jnp.sum(partials) * (float(T) * float(T) / (N * 8 * 128))


def distill_kl_ref(y_s, y_t, T):
    """Pure-JAX reference for validation (math in f32, like the kernel)."""
    y_s = y_s.astype(jnp.float32)
    y_t = y_t.astype(jnp.float32)
    log_p_s = jax.nn.log_softmax(y_s / T, axis=1)
    log_p_t = jax.nn.log_softmax(y_t / T, axis=1)
    p_t = jnp.exp(log_p_t)
    return jnp.sum(p_t * (log_p_t - log_p_s)) / y_s.shape[0] * (T ** 2)


if __name__ == "__main__":
    T = 4.0
    key = jax.random.PRNGKey(0)
    k1, k2, k3, k4 = jax.random.split(key, 4)

    # --- f32 path: batch=20 (non-multiple of the tile), num_classes=32 ---
    N, C = 20, 32
    y_s = jax.random.normal(k1, (N, C), dtype=jnp.float32)
    y_t = jax.random.normal(k2, (N, C), dtype=jnp.float32)
    ref = distill_kl_ref(y_s, y_t, T)

    # 1) Multi-tile path (tile_n=8 -> 3 tiles, last one partial -> mask path).
    loss_tiled = jax.block_until_ready(distill_kl(y_s, y_t, T, tile_n=8))
    assert jnp.allclose(loss_tiled, ref, rtol=1e-5, atol=1e-5), (loss_tiled, ref)

    # 2) Default auto-tiling path (single block for this tiny shape).
    loss_auto = jax.block_until_ready(distill_kl(y_s, y_t, T))
    assert jnp.allclose(loss_auto, ref, rtol=1e-5, atol=1e-5), (loss_auto, ref)

    # --- bf16 path (halved DMA bytes), plus the v7x approx-reciprocal knob ---
    Nb, Cb = 32, 128
    y_s_bf = jax.random.normal(k3, (Nb, Cb), dtype=jnp.float32).astype(jnp.bfloat16)
    y_t_bf = jax.random.normal(k4, (Nb, Cb), dtype=jnp.float32).astype(jnp.bfloat16)
    ref_bf = distill_kl_ref(y_s_bf, y_t_bf, T)

    loss_bf = jax.block_until_ready(distill_kl(y_s_bf, y_t_bf, T))
    assert jnp.allclose(loss_bf, ref_bf, rtol=1e-5, atol=1e-5), (loss_bf, ref_bf)

    loss_bf_approx = jax.block_until_ready(
        distill_kl(y_s_bf, y_t_bf, T, approx_recip=True))
    assert jnp.allclose(loss_bf_approx, ref_bf, rtol=1e-3, atol=1e-3), (
        loss_bf_approx, ref_bf)

    print("KERNEL_OK")
</pallas_src>

<mosaic_0001>
module attributes {stable_mosaic.version = 11 : i64} {
  func.func @_distill_kl_kernel(%arg0: i32, %arg1: memref<8x32xf32, #tpu.memory_space<vmem>>, %arg2: memref<8x32xf32, #tpu.memory_space<vmem>>, %arg3: memref<8x128xf32, #tpu.memory_space<vmem>>) attributes {dimension_semantics = [#tpu.dimension_semantics<parallel>], iteration_bounds = array<i64: 3>, scalar_prefetch = 0 : i64, scratch_operands = 0 : i64, tpu.core_type = #tpu.core_type<tc>, window_params = [{transform_indices = @transform_0, window_bounds = array<i64: 8, 32>}, {transform_indices = @transform_1, window_bounds = array<i64: 8, 32>}, {transform_indices = @transform_2, window_bounds = array<i64: 8, 128>}]} {
    %c0 = arith.constant 0 : index
    %c0_0 = arith.constant 0 : index
    %0 = vector.load %arg1[%c0, %c0_0] : memref<8x32xf32, #tpu.memory_space<vmem>>, vector<8x32xf32>
    %cst = arith.constant 2.500000e-01 : f32
    %1 = vector.broadcast %cst : f32 to vector<8x32xf32>
    %2 = arith.mulf %0, %1 : vector<8x32xf32>
    %c0_1 = arith.constant 0 : index
    %c0_2 = arith.constant 0 : index
    %3 = vector.load %arg2[%c0_1, %c0_2] : memref<8x32xf32, #tpu.memory_space<vmem>>, vector<8x32xf32>
    %cst_3 = arith.constant 2.500000e-01 : f32
    %4 = vector.broadcast %cst_3 : f32 to vector<8x32xf32>
    %5 = arith.mulf %3, %4 : vector<8x32xf32>
    %cst_4 = arith.constant dense<0xFF800000> : vector<8xf32>
    %6 = vector.multi_reduction <maximumf>, %2, %cst_4 [1] : vector<8x32xf32> to vector<8xf32>
    %7 = vector.shape_cast %6 : vector<8xf32> to vector<8x1xf32>
    %8 = vector.broadcast %7 : vector<8x1xf32> to vector<8x32xf32>
    %9 = arith.subf %2, %8 : vector<8x32xf32>
    %cst_5 = arith.constant dense<0xFF800000> : vector<8xf32>
    %10 = vector.multi_reduction <maximumf>, %5, %cst_5 [1] : vector<8x32xf32> to vector<8xf32>
    %11 = vector.shape_cast %10 : vector<8xf32> to vector<8x1xf32>
    %12 = vector.broadcast %11 : vector<8x1xf32> to vector<8x32xf32>
    %13 = arith.subf %5, %12 : vector<8x32xf32>
    %14 = math.exp %9 : vector<8x32xf32>
    %cst_6 = arith.constant dense<0.000000e+00> : vector<8xf32>
    %15 = vector.multi_reduction <add>, %14, %cst_6 [1] : vector<8x32xf32> to vector<8xf32>
    %16 = vector.shape_cast %15 : vector<8xf32> to vector<8x1xf32>
    %17 = math.exp %13 : vector<8x32xf32>
    %cst_7 = arith.constant dense<0.000000e+00> : vector<8xf32>
    %18 = vector.multi_reduction <add>, %17, %cst_7 [1] : vector<8x32xf32> to vector<8xf32>
    %19 = vector.shape_cast %18 : vector<8xf32> to vector<8x1xf32>
    %20 = math.log %19 : vector<8x1xf32>
    %21 = math.log %16 : vector<8x1xf32>
    %22 = arith.subf %20, %21 : vector<8x1xf32>
    %23 = arith.subf %13, %9 : vector<8x32xf32>
    %24 = vector.broadcast %22 : vector<8x1xf32> to vector<8x32xf32>
    %25 = arith.subf %23, %24 : vector<8x32xf32>
    %26 = arith.mulf %17, %25 : vector<8x32xf32>
    %cst_8 = arith.constant dense<0.000000e+00> : vector<8xf32>
    %27 = vector.multi_reduction <add>, %26, %cst_8 [1] : vector<8x32xf32> to vector<8xf32>
    %28 = vector.shape_cast %27 : vector<8xf32> to vector<8x1xf32>
    %29 = tpu.reciprocal %19 : vector<8x1xf32> -> vector<8x1xf32>
    %30 = arith.mulf %28, %29 : vector<8x1xf32>
    %c8_i32 = arith.constant 8 : i32
    %31 = arith.muli %arg0, %c8_i32 : i32
    %32 = tpu.iota {dimensions = array<i32: 0>} : vector<8x1xi32>
    %33 = vector.broadcast %31 : i32 to vector<8x1xi32>
    %34 = arith.addi %33, %32 : vector<8x1xi32>
    %c20_i32 = arith.constant 20 : i32
    %35 = vector.broadcast %c20_i32 : i32 to vector<8x1xi32>
    %36 = arith.cmpi slt, %34, %35 : vector<8x1xi32>
    %cst_9 = arith.constant 0.000000e+00 : f32
    %37 = vector.broadcast %cst_9 : f32 to vector<8x1xf32>
    %38 = arith.select %36, %30, %37 : vector<8x1xi1>, vector<8x1xf32>
    %39 = vector.shape_cast %38 : vector<8x1xf32> to vector<1x8x1xf32>
    %cst_10 = arith.constant dense<0.000000e+00> : vector<1xf32>
    %40 = vector.multi_reduction <add>, %39, %cst_10 [1, 2] : vector<1x8x1xf32> to vector<1xf32>
    %41 = vector.shape_cast %40 : vector<1xf32> to vector<1x1x1xf32>
    %42 = vector.extract %41[0, 0, 0] : f32 from vector<1x1x1xf32>
    %cst_11 = arith.constant 0.000000e+00 : f32
    %43 = vector.broadcast %cst_11 : f32 to vector<8x128xf32>
    %44 = vector.broadcast %42 : f32 to vector<8x128xf32>
    %45 = arith.addf %43, %44 : vector<8x128xf32>
    %c0_12 = arith.constant 0 : index
    %c0_13 = arith.constant 0 : index
    %46 = vector.load %arg3[%c0_12, %c0_13] : memref<8x128xf32, #tpu.memory_space<vmem>>, vector<8x128xf32>
    tpu.vector_store %arg3[%c0_12, %c0_13], %45 {strides = array<i32>} : memref<8x128xf32, #tpu.memory_space<vmem>>, vector<8x128xf32>,
    return
  }
  func.func @transform_0(%arg0: i32) -> (i32, i32) {
    %c0_i32 = arith.constant 0 : i32
    %c0_i32_0 = arith.constant 0 : i32
    return %arg0, %c0_i32 : i32, i32
  }
  func.func @transform_1(%arg0: i32) -> (i32, i32) {
    %c0_i32 = arith.constant 0 : i32
    %c0_i32_0 = arith.constant 0 : i32
    return %arg0, %c0_i32 : i32, i32
  }
  func.func @transform_2(%arg0: i32) -> (i32, i32) {
    %c0_i32 = arith.constant 0 : i32
    %c0_i32_0 = arith.constant 0 : i32
    return %c0_i32, %arg0 : i32, i32
  }
}

</mosaic_0001>

<bundles_post_ra>
// kernel: tpu_custom_call.1
= control target key start
LH: loop header
LB: loop body
LE: loop exit
PB: predicated region body
PF: predicated region fallthrough
CT: control target
= control target key end

     0   :  { %7 = vsyncpa [#allocation3], 0  ;;  %s807_s0 = inlined_call_operand.hbm [shape: f32[20,32], index: 0, kind: input, shape index: {}]   ;;  %s808_s1 = inlined_call_operand.hbm [shape: f32[20,32], index: 1, kind: input, shape index: {}]   ;;  %s809_s2 = inlined_call_operand.hbm [shape: f32[8,384], index: 2, kind: output, shape index: {}]  }
   0x1   :  { %9 = vsyncpa [#allocation3 + $0x1], 0 }
   0x2   :  { %10 = vsyncpa [#allocation6], 0 }
   0x3   :  { %12 = vsyncpa [#allocation6 + $0x1], 0 }
   0x4   :  { %13 = vsyncpa [#allocation4], 0 }
   0x5   :  { %15 = vsyncpa [#allocation4 + $0x1], 0  ;;  %s589_s9 = smov 0   ;;  %s591_s10 = smov 0  }
   0x6   :  { %s593_s11 = smov 0   ;;  %s595_s12 = smov 0  }
   0x7 LB: > { %s610_s13 = sadd.s32 4294967295, %s569_s12   ;;  %s360_s14 = sadd.s32 4294967294, %s569_s12   ;;  %s569_s12 = sphi %s595_s12, %s827_s12   ;;  %s565_s11 = sphi %s593_s11, %s826_s11   ;;  %s561_s10 = sphi %s591_s10, %s825_s10   ;;  %s557_s9 = sphi %s589_s9, %s824_s9  }
   0x8   : > { %s614_s15 = sadd.s32 1, %s569_s12   ;;  %s28_s16 = sadd.s32 1, %s565_s11 }
   0x9   : > { %s25_s17 = ssub.s32 %s569_s12, %s614_s15  ;;  %p35_p0 = scmp.ne.s32.totalorder %s565_s11, %s561_s10 }
   0xa   : > { %p26_p1 = scmp.eq.s32.totalorder %s25_s17, 0  ;;  %p36_p2 = scmp.eq.s32.totalorder %s569_s12, 0 }
   0xb   : > { %p41_p3 = scmp.ne.s32.totalorder %s561_s10, %s557_s9  ;;  %p42_p4 = scmp.eq.s32.totalorder %s610_s13, 0 }
   0xc   : > { %s626_s18 = scalar_select %p26_p1, %s565_s11, %s28_s16  }
   0xd   : > { %p628_p5 = por %p36_p2, %p35_p0  ;;  %p632_p6 = por %p42_p4, %p41_p3 }
   0xe   : > { %p91_p7 = scmp.eq.s32.totalorder %s610_s13, 2  ;;  %p97_p8 = scmp.eq.s32.totalorder %s360_s14, 2 }
   0xf   : > { %s813_s20 = scalar_select %p632_p6, 1, 0 }
  0x10   : > { %p395_p9 = scmp.lt.s32.totalorder %s569_s12, 3  ;;  %p638_p10 = por %p91_p7, %p35_p0 }
  0x11   : > { %p642_p11 = por %p97_p8, %p41_p3  ;;  %s647_s23 = sand.u32 1, %s565_s11  }
  0x12   : > { %s814_s21 = scalar_select %p638_p10, 1, 0 }
  0x13   : > { %s815_s22 = scalar_select %p642_p11, 1, 0 }
  0x14   : > { %s364_s24 = sshll.u32 %s569_s12, 7  ;;  %s363_s25 = sshll.u32 %s647_s23, 3 }
  0x15   : > { %s656_s28 = scalar_lea.hbm %s807_s0, %s364_s24  ;;  %s121_s29 = scalar_lea.vmem [#allocation2], %s363_s25 }
  0x16   : > { %s128_s30 = sshll.u32 %s121_s29, 4  ;;  %p662_p12 = pnand %p395_p9, %p628_p5  ;;  %s666_s30 = int_to_ptr.vmem [resolvable:$true] %s128_s30 }
  0x17   : > { %s118_s4 = scalar_lea.sflag [#allocation3], %s647_s23  ;;  %s439_s5 = scalar_lea.hbm %s656_s28, 128 }
  0x18   : > { %p440_p1 = scmp.ne.s32.totalorder %s656_s28, %s439_s5  ;;  %p441_p2 = pneg %p662_p12 }
  0x19   : > { %s444_s8 = scalar_lea.hbm %s807_s0, 384  ;;  %p445_p5 = scmp.lt.u32.totalorder %s656_s28, %s807_s0 }
  0x1a   : > { %p442_p3 = pnand %p441_p2, %p440_p1  ;;  %p446_p7 = scmp.lt.u32.totalorder %s444_s8, %s439_s5 }
  0x1b   : > { %p448_p9 = scmp.lt.u32.totalorder %s439_s5, %s656_s28 }
  0x1c   : > { %p443_p4 = pneg %p442_p3  ;;  %p447_p8 = por %p446_p7, %p445_p5 }
  0x1e   : > { %p449_p13 = por %p448_p9, %p447_p8 }
  0x20   : > { %p450_p0 = pnand %p449_p13, %p443_p4 }
  0x22   : > { %453 = shalt.err (!%p450_p0)
}
  0x23   : > { %s454_s17 = scalar_lea.vmem %s666_s30, 128  ;;  %s571_s19 = smov [#allocation2]  }
  0x24   : > { %p455_p1 = scmp.ne.s32.totalorder %s666_s30, %s454_s17  ;;  %s459_s26 = sshll.u32 %s571_s19, 4  ;;  %s460_s26 = int_to_ptr.vmem [resolvable:$false] %s459_s26 }
  0x25   : > { %s461_s27 = scalar_lea.vmem %s460_s26, 256  ;;  %p462_p10 = scmp.lt.s32.totalorder %s666_s30, %s460_s26 }
  0x26   : > { %p457_p3 = pnand %p455_p1, %p441_p2  ;;  %p463_p5 = scmp.lt.s32.totalorder %s461_s27, %s454_s17 }
  0x28   : > { %p458_p11 = pneg %p457_p3  ;;  %p464_p7 = por %p463_p5, %p462_p10 }
  0x2a   : > { %p465_p8 = pnand %p464_p7, %p458_p11 }
  0x2c   : > { %468 = shalt.err (!%p465_p8)
}
  0x2d   : > { %387 = dma.hbm_to_vmem [thread:$0]  (!%p662_p12), %s656_s28, 128, %s666_s30, %s118_s4  }
  0x2e   : > { %p817_p13 = scmp.lt.s32.totalorder %s569_s12, 4  ;;  %p818_p0 = scmp.ge.s32.totalorder %s569_s12, 1 }
  0x2f   : > { %s709_s7 = scalar_lea.hbm %s808_s1, %s364_s24  ;;  %s139_s8 = scalar_lea.vmem [#allocation5], %s363_s25 }
  0x30   : > { %p700_p4 = pnand %p818_p0, %p817_p13  ;;  %s146_s14 = sshll.u32 %s139_s8, 4  ;;  %s147_s14 = int_to_ptr.vmem [resolvable:$true] %s146_s14 }
  0x31   : > { %s136_s28 = scalar_lea.sflag [#allocation6], %s647_s23  ;;  %s469_s30 = scalar_lea.hbm %s709_s7, 128 }
  0x32   : > { %s819_s29 = scalar_select %p700_p4, 1, 0 }
  0x33   : > { %p470_p10 = scmp.ne.s32.totalorder %s709_s7, %s469_s30  ;;  %s474_s24 = scalar_lea.hbm %s808_s1, 384 }
  0x34   : > { %p475_p1 = scmp.lt.u32.totalorder %s709_s7, %s808_s1  ;;  %p476_p3 = scmp.lt.u32.totalorder %s474_s24, %s469_s30 }
  0x35   : > { %p472_p11 = pnand %p470_p10, %p441_p2  ;;  %p478_p7 = scmp.lt.u32.totalorder %s469_s30, %s709_s7 }
  0x36   : > { %p477_p5 = por %p476_p3, %p475_p1 }
  0x37   : > { %p473_p9 = pneg %p472_p11 }
  0x38   : > { %p479_p8 = por %p478_p7, %p477_p5 }
  0x3a   : > { %p480_p13 = pnand %p479_p8, %p473_p9 }
  0x3c   : > { %483 = shalt.err (!%p480_p13)
}
  0x3d   : > { %s484_s23 = scalar_lea.vmem %s147_s14, 128  ;;  %s572_s25 = smov [#allocation5]  }
  0x3e   : > { %p485_p0 = scmp.ne.s32.totalorder %s147_s14, %s484_s23  ;;  %s489_s26 = sshll.u32 %s572_s25, 4  ;;  %s490_s26 = int_to_ptr.vmem [resolvable:$false] %s489_s26 }
  0x3f   : > { %s491_s27 = scalar_lea.vmem %s490_s26, 256  ;;  %p492_p6 = scmp.lt.s32.totalorder %s147_s14, %s490_s26 }
  0x40   : > { %p487_p10 = pnand %p485_p0, %p441_p2  ;;  %p493_p4 = scmp.lt.s32.totalorder %s491_s27, %s484_s23 }
  0x42   : > { %p488_p11 = pneg %p487_p10  ;;  %p494_p1 = por %p493_p4, %p492_p6 }
  0x44   : > { %p495_p3 = pnand %p494_p1, %p488_p11 }
  0x46   : > { %498 = shalt.err (!%p495_p3)
}
  0x47   : > { %390 = dma.hbm_to_vmem [thread:$0]  (!%p662_p12), %s709_s7, 128, %s147_s14, %s136_s28  }
  0x48   : > { %p820_p9 = scmp.ne.s32.totalorder %s819_s29, 0 }
  0x49   : > { %s736_s5 = sand.u32 (!%p820_p9), 1, %s561_s10   ;;  %p821_p6 = scmp.ne.s32.totalorder (!%p820_p9), %s813_s20, 0 }
  0x4a   : > { %155 = sbr.rel (%p820_p9) target bundleno = 777 (0x309), region = 28  ;;  %s739_s6 = sshll.u32 (!%p820_p9), %s736_s5, 3 }
  0x4b   : > { %s158_s8 = scalar_lea.sflag (!%p820_p9), [#allocation3], %s736_s5  ;;  %s161_s30 = scalar_lea.vmem (!%p820_p9), [#allocation2], %s739_s6 }
  0x51   : > { %544 = dma.done.wait (%p821_p6), %s158_s8, 128  }
  0x52   : > { %546 = vsyncadd (%p821_p6), %s158_s8, 4294967168  ;;  %s167_s3 = scalar_lea.sflag [#allocation6], %s736_s5  ;;  %s170_s29 = scalar_lea.vmem [#allocation5], %s739_s6 }
  0x53   : > { %548 = dma.done.wait (%p821_p6), %s167_s3, 128  }
  0x54   : > { %550 = vsyncadd (%p821_p6), %s167_s3, 4294967168  ;;  %v196_v0 = vld [vmem:[%s161_s30] sm:$0xff]  ;;  %vm200_vm0 = vcmask 261120   ;;  %v198_v1 = vld [vmem:[%s170_s29] sm:$0xff]  ;;  %v233_v27 = vlaneseq  ;;  %s371_s20 = sshll.u32 %s610_s13, 3  ;;  %vm239_vm2 = vcmask 7168  }
  0x55   : > { %v197_v2 = vmul.f32 0.25, %v196_v0  ;;  %v199_v3 = vmul.f32 0.25, %v198_v1  ;;  %v235_v29 = vstv %s371_s20  ;;  %s195_s7 = scalar_lea.vmem [#allocation7], %s739_s6  ;;  %s373_s28 = sshll.u32 %s610_s13, 7 }
  0x56   : > { %v234_v28 = vshrl.u32 %v233_v27, 7  ;;  %s267_s14 = sshll.u32 %s195_s7, 4  ;;  %s766_s17 = scalar_lea.hbm %s809_s2, %s373_s28  ;;  %s761_s14 = int_to_ptr.vmem [resolvable:$true] %s267_s14 }
  0x57   : > { %v201_v4 = vsel %vm200_vm0, %v197_v2, -inf  ;;  %v205_v5 = vsel %vm200_vm0, %v199_v3, -inf  ;;  %s254_s19 = scalar_lea.sflag [#allocation4], %s736_s5  ;;  %s499_s23 = scalar_lea.vmem %s761_s14, 128 }
  0x58   : > { %202 = vmax.xlane.f32.xlu0 %v201_v4  ;;  %v236_v30 = vadd.s32 %v235_v29, %v234_v28  ;;  %p500_p12 = scmp.ne.s32.totalorder %s761_s14, %s499_s23  ;;  %p822_p2 = scmp.ne.s32.totalorder %s814_s21, 0 }
  0x59   : > { %s573_s13 = smov [#allocation7]  }
  0x5a   : > { %vm237_vm1 = vcmp.lt.s32.totalorder %v236_v30, 20  ;;  %p501_p4 = pnand %p500_p12, %p822_p2  ;;  %s503_s25 = sshll.u32 %s573_s13, 4  ;;  %s504_s25 = int_to_ptr.vmem [resolvable:$false] %s503_s25 }
  0x5b   : > { %s505_s26 = scalar_lea.vmem %s504_s25, 256  ;;  %p506_p7 = scmp.lt.s32.totalorder %s761_s14, %s504_s25 }
  0x5c   : > { %206 = vmax.xlane.f32.xlu0 %v205_v5  ;;  %p502_p5 = pneg %p501_p4  ;;  %p507_p8 = scmp.lt.s32.totalorder %s505_s26, %s499_s23 }
  0x5e   : > { %p508_p13 = por %p507_p8, %p506_p7 }
  0x60   : > { %p509_p0 = pnand %p508_p13, %p502_p5 }
  0xe5   : > { %v203_v6 = vpop.xlane.xlu0 %202 }
  0xe6   : > { %v204_v7 = vsub.f32 %v197_v2, %v203_v6 }
  0xe8   : > { %v209_v8 = vmul.f32 1.442695, %v204_v7 }
  0xe9   : > { %v207_v9 = vpop.xlane.xlu0 %206 }
  0xea   : > { %429 = vpow2.f32 %v209_v8  ;;  %v208_v10 = vsub.f32 %v199_v3, %v207_v9 }
  0xec   : > { %v214_v11 = vmul.f32 1.442695, %v208_v10  ;;  %v224_v12 = vsub.f32 %v208_v10, %v204_v7 }
  0xee   : > { %431 = vpow2.f32 %v214_v11 }
  0xf4   : > { %v430_v13 = vpop.eup %429 }
  0xf5   : > { %v211_v14 = vsel %vm200_vm0, %v430_v13, 0.0 }
  0xf6   : > { %212 = vadd.xlane.f32.xlu1 %v211_v14 }
  0xf8   : > { %v432_v15 = vpop.eup %431 }
  0xf9   : > { %v216_v16 = vsel %vm200_vm0, %v432_v15, 0.0 }
  0xfa   : > { %217 = vadd.xlane.f32.xlu1 %v216_v16 }
 0x183   : > { %v213_v17 = vpop.xlane.xlu1 %212 }
 0x184   : > { %433 = vlog2.f32 %v213_v17 }
 0x187   : > { %v218_v18 = vpop.xlane.xlu1 %217 }
 0x188   : > { %435 = vlog2.f32 %v218_v18 }
 0x189   : > { %437 = vrcp.f32 %v218_v18 }
 0x18e   : > { %v434_v19 = vpop.eup %433 }
 0x18f   : > { %v222_v21 = vmul.f32 0.6931472, %v434_v19 }
 0x192   : > { %v436_v20 = vpop.eup %435 }
 0x193   : > { %v220_v22 = vmul.f32 0.6931472, %v436_v20  ;;  %v438_v31 = vpop.eup %437 }
 0x195   : > { %v223_v23 = vsub.f32 %v220_v22, %v222_v21 }
 0x197   : > { %v225_v24 = vsub.f32 %v224_v12, %v223_v23 }
 0x199   : > { %v226_v25 = vmul.f32 %v432_v15, %v225_v24 }
 0x19b   : > { %v227_v26 = vsel %vm200_vm0, %v226_v25, 0.0 }
 0x19c   : > { %228 = vadd.xlane.f32.xlu0 %v227_v26 }
 0x229   : > { %v229_v32 = vpop.xlane.xlu0 %228 }
 0x22a   : > { %v231_v33 = vmul.f32 %v438_v31, %v229_v32 }
 0x22c   : > { %v238_v34 = vsel %vm237_vm1, %v231_v33, 0.0 }
 0x22d   : > { %v240_v35 = vsel %vm239_vm2, %v238_v34, 0.0 }
 0x22e   : > { %241 = vadd.xlane.f32.xlu1 %v240_v35 }
 0x2bb   : > { %v242_v36 = vpop.xlane.xlu1 %241 }
 0x2bc   : > { %v243_v37 = vrot.slane %v242_v36, 4 }
 0x2be   : > { %v244_v38 = vadd.f32 %v243_v37, %v242_v36 }
 0x2c0   : > { %v245_v39 = vrot.slane %v244_v38, 2 }
 0x2c2   : > { %v246_v40 = vadd.f32 %v245_v39, %v244_v38 }
 0x2c4   : > { %v247_v41 = vrot.slane %v246_v40, 1 }
 0x2c6   : > { %v248_v42 = vadd.f32 %v247_v41, %v246_v40 }
 0x2c8   : > { %376 = vpush %v248_v42 }
 0x2f9   : > { %s377_s4 = spop %376 }
 0x2fa   : > { %v250_v43 = vstv %s377_s4 }
 0x2fb   : > { %252 = vst [vmem:[%s195_s7] sm:$0xff] %v250_v43 }
 0x2fc   : > { %512 = shalt.err (!%p509_p0)
}
 0x2fd   : > { %s513_s27 = scalar_lea.hbm %s766_s17, 128  ;;  %s517_s8 = scalar_lea.hbm %s809_s2, 384 }
 0x2fe   : > { %p514_p10 = scmp.ne.s32.totalorder %s766_s17, %s513_s27  ;;  %p518_p3 = scmp.lt.u32.totalorder %s766_s17, %s809_s2 }
 0x2ff   : > { %p519_p9 = scmp.lt.u32.totalorder %s517_s8, %s513_s27  ;;  %p521_p12 = scmp.lt.u32.totalorder %s513_s27, %s766_s17 }
 0x300   : > { %p515_p11 = pnand %p514_p10, %p822_p2 }
 0x301   : > { %p520_p6 = por %p519_p9, %p518_p3 }
 0x302   : > { %p516_p1 = pneg %p515_p11 }
 0x303   : > { %p522_p4 = por %p521_p12, %p520_p6 }
 0x305   : > { %p523_p5 = pnand %p522_p4, %p516_p1 }
 0x307   : > { %526 = shalt.err (!%p523_p5)
}
 0x308   : > { %382 = dma.vmem_to_hbm [thread:$0]  (%p822_p2), %s761_s14, 128, %s766_s17, %s254_s19  }
 0x309 PF: > { %p396_p7 = scmp.ge.s32.totalorder %s569_s12, 2  ;;  %s279_s29 = sand.u32 1, %s557_s9  }
 0x30a   : > { %p823_p8 = scmp.ne.s32.totalorder %s815_s22, 0  ;;  %s280_s20 = scalar_lea.sflag [#allocation4], %s279_s29 }
 0x30c   : > { %p392_p13 = pnand %p396_p7, %p823_p8 }
 0x30e   : > { %552 = dma.done.wait (!%p392_p13), %s280_s20, 128  }
 0x30f   : > { %554 = vsyncadd (!%p392_p13), %s280_s20, 4294967168  ;;  %p18_p0 = scmp.ge.s32.totalorder %s614_s15, 5   ;;  %s824_s9 = smov %s561_s10 }
 0x310   : > { %s825_s10 = smov %s565_s11  ;;  %s826_s11 = smov %s626_s18 }
 0x311   : > { %s827_s12 = smov %s614_s15  ;;  %20 = sbr.rel (!%p18_p0) target bundleno = 7 (0x7), region = 86 }
 0x318   :  { %285 = vsyncpa [#allocation3], 1 }
 0x319   :  { %287 = vsyncpa [#allocation3 + $0x1], 1 }
 0x31a   :  { %288 = vsyncpa [#allocation6], 1 }
 0x31b   :  { %290 = vsyncpa [#allocation6 + $0x1], 1 }
 0x31c   :  { %291 = vsyncpa [#allocation4], 1 }
 0x31d   :  { %293 = vsyncpa [#allocation4 + $0x1], 1 }

</bundles_post_ra>
